<compile_context>
chip_gen: v5e
topology: v5e:2x2
jax: 0.10.0
libtpu: 0.0.40
codegen_flags: <defaults>
</compile_context>

<pallas_src>
from functools import partial

import jax
import jax.numpy as jnp
from jax.experimental import pallas as pl
from jax.experimental.pallas import tpu as pltpu

EPS = 1e-5
OUT_CHANNELS = 256
LANE = 128
VMEM_LIMIT = 48 * 1024 * 1024   # fits v7x's 64 MiB/TC with headroom (<< v5e/v6e 128 MiB)


# ----------------------------- Pallas kernels -----------------------------

def _aspp_fused_kernel(x_hbm, fb_ref, w0_ref, w3_ref, bbr_ref, wp_ref,
                       o_ref, xbuf, sem, *, TH, P, W, rates):
    """All conv branches + fused 1x1 projection for one (image, row-tile)."""
    n = pl.program_id(0)
    h = pl.program_id(1)
    L = TH + 2 * P

    # Manually DMA the halo'd row slab of the (once-padded) input for this tile.
    dma = pltpu.make_async_copy(x_hbm.at[n, pl.ds(h * TH, L)], xbuf, sem)
    dma.start()
    dma.wait()
    # TODO(synk): cross-step double-buffering of this slab would hide the DMA,
    # but needs per-core priming which conflicts with splitting the parallel
    # grid across megacore TCs; the slab is small next to the matmul work.

    Cp = xbuf.shape[-1]
    Cout = o_ref.shape[-1]
    R = TH * W
    cdt = xbuf.dtype

    def tap(r0, c0):
        # (TH, W, Cp) window of the slab, flattened to MXU rows (lane-dense Cp).
        return xbuf[r0:r0 + TH, c0:c0 + W, :].reshape(R, Cp)

    fbn = fb_ref[0]                                    # (1, Cout) per-image bias (f32)

    # --- branch 0: 1x1 conv (BN scale folded) + bias + ReLU, then project ---
    s = jnp.dot(tap(P, P), w0_ref[...], preferred_element_type=jnp.float32)
    y = jnp.maximum(s + bbr_ref[0:1, :], 0.0).astype(cdt)
    acc = jnp.dot(y, wp_ref[0], preferred_element_type=jnp.float32) + fbn

    # --- dilated 3x3 branches, each projected straight into the accumulator --
    for b, d in enumerate(rates):
        s = jnp.zeros((R, Cout), jnp.float32)
        for kh in range(3):
            for kw in range(3):
                s = s + jnp.dot(tap(P + (kh - 1) * d, P + (kw - 1) * d),
                                w3_ref[b, kh, kw],
                                preferred_element_type=jnp.float32)
        y = jnp.maximum(s + bbr_ref[b + 1:b + 2, :], 0.0).astype(cdt)
        acc = acc + jnp.dot(y, wp_ref[b + 1], preferred_element_type=jnp.float32)

    # Projection BN scale folded into wp slices / fb; ReLU epilogue.
    # Dropout(0.5) is identity at inference.
    o_ref[...] = jnp.maximum(acc, 0.0).reshape(1, TH, W, Cout).astype(o_ref.dtype)


def _pool_kernel(x_ref, w4_ref, b4_ref, wp4_ref, o_ref, sum_ref, *, inv_hw):
    """Global-avg-pool branch -> per-image projection contribution (tiled sum)."""
    h = pl.program_id(1)

    @pl.when(h == 0)
    def _():
        sum_ref[...] = jnp.zeros_like(sum_ref)

    xt = x_ref[...].astype(jnp.float32)                # (1, TH, W, Cp)
    sum_ref[...] += jnp.sum(xt.reshape(-1, xt.shape[-1]), axis=0, keepdims=True)

    @pl.when(h == pl.num_programs(1) - 1)
    def _():
        mean = sum_ref[...] * inv_hw                   # (1, Cp)
        y = jnp.dot(mean, w4_ref[...], preferred_element_type=jnp.float32)
        y = jnp.maximum(y + b4_ref[...], 0.0)          # BN folded + ReLU
        contrib = jnp.dot(y, wp4_ref[...], preferred_element_type=jnp.float32)
        o_ref[...] = contrib.reshape(1, 1, contrib.shape[-1])


# ------------------------------- wrappers ----------------------------------

def _pick_row_tile(H, W, target_rows=1024):
    """Largest divisor of H giving ~target_rows flattened rows per tile."""
    t = max(1, min(target_rows // max(W, 1), max(H // 2, 1)))
    while H % t:
        t -= 1
    return t


def _pool_branch(x_cp, w4s, b4, wp4s, *, TH):
    N, H, W, Cp = x_cp.shape
    Cout = w4s.shape[1]
    NH = H // TH
    return pl.pallas_call(
        partial(_pool_kernel, inv_hw=1.0 / float(H * W)),
        out_shape=jax.ShapeDtypeStruct((N, 1, Cout), jnp.float32),
        grid_spec=pltpu.PrefetchScalarGridSpec(
            num_scalar_prefetch=0,
            grid=(N, NH),
            in_specs=[
                pl.BlockSpec((1, TH, W, Cp), lambda n, h: (n, h, 0, 0)),
                pl.BlockSpec((Cp, Cout), lambda n, h: (0, 0)),
                pl.BlockSpec((1, Cout), lambda n, h: (0, 0)),
                pl.BlockSpec((Cout, Cout), lambda n, h: (0, 0)),
            ],
            out_specs=pl.BlockSpec((1, 1, Cout), lambda n, h: (n, 0, 0)),
            scratch_shapes=[pltpu.VMEM((1, Cp), jnp.float32)],
        ),
        compiler_params=pltpu.CompilerParams(
            dimension_semantics=("parallel", "arbitrary"),
            vmem_limit_bytes=VMEM_LIMIT),
    )(x_cp, w4s, b4, wp4s)


def _fused_branches_project(xpad, fb, w0s, w3s, bbr, wp_s, *, rates, TH, P, H, W):
    N, _, Wp, Cp = xpad.shape
    Cout = w0s.shape[1]
    nb = len(rates)
    NH = H // TH
    # TODO(synk): for very large Cin (e.g. 2048 backbones) add a K (input
    # channel) grid axis + VMEM accumulator so the stacked 3x3 weights need
    # not be fully VMEM-resident.
    return pl.pallas_call(
        partial(_aspp_fused_kernel, TH=TH, P=P, W=W, rates=tuple(rates)),
        out_shape=jax.ShapeDtypeStruct((N, H, W, Cout), jnp.float32),
        grid_spec=pltpu.PrefetchScalarGridSpec(
            num_scalar_prefetch=0,
            grid=(N, NH),
            in_specs=[
                pl.BlockSpec(memory_space=pl.ANY),                      # padded x (HBM)
                pl.BlockSpec((1, 1, Cout), lambda n, h: (n, 0, 0)),     # per-image bias
                pl.BlockSpec((Cp, Cout), lambda n, h: (0, 0)),          # 1x1 weights
                pl.BlockSpec((nb, 3, 3, Cp, Cout),
                             lambda n, h: (0, 0, 0, 0, 0)),             # 3x3 weights
                pl.BlockSpec((nb + 1, Cout), lambda n, h: (0, 0)),      # branch biases
                pl.BlockSpec((nb + 1, Cout, Cout),
                             lambda n, h: (0, 0, 0)),                   # proj slices
            ],
            out_specs=pl.BlockSpec((1, TH, W, Cout), lambda n, h: (n, h, 0, 0)),
            scratch_shapes=[
                pltpu.VMEM((TH + 2 * P, Wp, Cp), xpad.dtype),           # row slab
                pltpu.SemaphoreType.DMA(()),
            ],
        ),
        compiler_params=pltpu.CompilerParams(
            dimension_semantics=("parallel", "parallel"),
            vmem_limit_bytes=VMEM_LIMIT),
    )(xpad, fb, w0s, w3s, bbr, wp_s)


def aspp_forward(x_nchw, p, rates, *, compute_dtype=jnp.bfloat16):
    """ASPP forward (inference). compute_dtype = matmul input dtype (f32 accumulation)."""
    N, Cin, H, W = x_nchw.shape
    Cout = OUT_CHANNELS
    nb = len(rates)
    P = max(rates)
    Cp = ((Cin + LANE - 1) // LANE) * LANE        # lane-dense contraction dim
    TH = _pick_row_tile(H, W)

    def padc(w):                                  # zero-pad input-channel axis to Cp
        return jnp.pad(w, ((0, Cp - Cin),) + ((0, 0),) * (w.ndim - 1))

    # Fold BN scales into conv / projection weights (exact in eval mode).
    w0s = padc(p["w0"] * p["s0"]).astype(compute_dtype)                     # (Cp, Cout)
    w3s = jnp.stack([p[f"w{i+1}"] * p[f"s{i+1}"] for i in range(nb)])       # (nb,3,3,Cin,Cout)
    w3s = jnp.pad(w3s, ((0, 0), (0, 0), (0, 0),
                        (0, Cp - Cin), (0, 0))).astype(compute_dtype)
    bbr = jnp.stack([p["b0"]] + [p[f"b{i+1}"] for i in range(nb)]).astype(jnp.float32)
    wp_sc = (p["wp"] * p["sp"]).reshape(nb + 2, Cout, Cout)                 # proj BN scale folded
    wp_s = wp_sc[:nb + 1].astype(compute_dtype)
    wp4s = wp_sc[nb + 1].astype(jnp.float32)
    w4s = padc(p["w4"] * p["s4"]).astype(jnp.float32)
    b4 = p["b4"].reshape(1, Cout).astype(jnp.float32)
    bp = p["bp"].reshape(1, 1, Cout).astype(jnp.float32)

    # NCHW -> NHWC, pad channels to lane multiple, pad spatial halo ONCE.
    x = jnp.transpose(x_nchw, (0, 2, 3, 1)).astype(compute_dtype)
    x_cp = jnp.pad(x, ((0, 0), (0, 0), (0, 0), (0, Cp - Cin)))              # (N,H,W,Cp)
    xpad = jnp.pad(x_cp, ((0, 0), (P, P), (P, P), (0, 0)))                  # (N,H+2P,W+2P,Cp)

    # Pooled branch -> spatially constant per-image projection bias (+ proj BN bias).
    fb = _pool_branch(x_cp, w4s, b4, wp4s, TH=TH) + bp                      # (N,1,Cout)

    y = _fused_branches_project(xpad, fb, w0s, w3s, bbr, wp_s,
                                rates=rates, TH=TH, P=P, H=H, W=W)          # (N,H,W,Cout)
    return jnp.transpose(y, (0, 3, 1, 2))                                   # back to NCHW


# -------------------------- parameter construction -------------------------

def make_bn_affine(key, c):
    k1, k2, k3, k4 = jax.random.split(key, 4)
    gamma = jax.random.uniform(k1, (c,), minval=0.5, maxval=1.5)
    beta = 0.1 * jax.random.normal(k2, (c,))
    mean = 0.1 * jax.random.normal(k3, (c,))
    var = jax.random.uniform(k4, (c,), minval=0.5, maxval=1.5)
    scale = gamma / jnp.sqrt(var + EPS)
    bias = beta - mean * scale
    return scale.astype(jnp.float32), bias.astype(jnp.float32)


def make_params(key, in_channels, rates):
    keys = jax.random.split(key, 12)
    p = {}
    p["w0"] = 0.1 * jax.random.normal(keys[0], (in_channels, OUT_CHANNELS),
                                      dtype=jnp.float32)
    p["s0"], p["b0"] = make_bn_affine(keys[1], OUT_CHANNELS)
    for i in range(3):
        p[f"w{i+1}"] = 0.1 * jax.random.normal(
            keys[2 + 2 * i], (3, 3, in_channels, OUT_CHANNELS), dtype=jnp.float32)
        p[f"s{i+1}"], p[f"b{i+1}"] = make_bn_affine(keys[3 + 2 * i], OUT_CHANNELS)
    p["w4"] = 0.1 * jax.random.normal(keys[8], (in_channels, OUT_CHANNELS),
                                      dtype=jnp.float32)
    p["s4"], p["b4"] = make_bn_affine(keys[9], OUT_CHANNELS)
    p["wp"] = 0.05 * jax.random.normal(keys[10], (5 * OUT_CHANNELS, OUT_CHANNELS),
                                       dtype=jnp.float32)
    p["sp"], p["bp"] = make_bn_affine(keys[11], OUT_CHANNELS)
    return p


# ------------------------- pure-JAX reference check -------------------------

def ref_forward(x_nchw, p, rates):
    x = x_nchw.astype(jnp.float32)
    dn = ("NCHW", "OIHW", "NCHW")

    def bnrelu(y, s, b):
        return jnp.maximum(y * s[None, :, None, None] + b[None, :, None, None], 0.0)

    outs = []
    w0 = jnp.transpose(p["w0"], (1, 0))[:, :, None, None]
    outs.append(bnrelu(jax.lax.conv_general_dilated(
        x, w0, (1, 1), "VALID", dimension_numbers=dn), p["s0"], p["b0"]))
    for i, d in enumerate(rates):
        w = jnp.transpose(p[f"w{i+1}"], (3, 2, 0, 1))
        y = jax.lax.conv_general_dilated(
            x, w, (1, 1), [(d, d), (d, d)], rhs_dilation=(d, d),
            dimension_numbers=dn)
        outs.append(bnrelu(y, p[f"s{i+1}"], p[f"b{i+1}"]))
    xm = jnp.mean(x, axis=(2, 3))                                  # (N, Cin)
    y4 = jnp.maximum(xm @ p["w4"] * p["s4"] + p["b4"], 0.0)        # (N, Cout)
    N, _, H, W = x.shape
    outs.append(jnp.broadcast_to(y4[:, :, None, None], (N, OUT_CHANNELS, H, W)))
    cat = jnp.concatenate(outs, axis=1)
    yp = jnp.einsum("nchw,cd->ndhw", cat, p["wp"])
    return jnp.maximum(yp * p["sp"][None, :, None, None]
                       + p["bp"][None, :, None, None], 0.0)


# ---------------------------------- main ------------------------------------

if __name__ == "__main__":
    key = jax.random.PRNGKey(0)
    kx, kp = jax.random.split(key)

    in_channels = 4
    atrous_rates = (1, 2, 3)
    x = jax.random.normal(kx, (2, in_channels, 16, 16), dtype=jnp.float32)  # NCHW

    params = make_params(kp, in_channels, atrous_rates)
    ref = jax.block_until_ready(ref_forward(x, params, atrous_rates))

    # f32 matmul path: strict check of the fused-kernel algorithm.
    out32 = jax.block_until_ready(
        aspp_forward(x, params, atrous_rates, compute_dtype=jnp.float32))
    assert out32.shape == (2, OUT_CHANNELS, 16, 16), out32.shape
    assert jnp.allclose(out32, ref, rtol=2e-3, atol=2e-3), \
        float(jnp.max(jnp.abs(out32 - ref)))

    # bf16 matmul path (preferred on v6e/v7x): f32 accumulation, looser tol.
    out16 = jax.block_until_ready(
        aspp_forward(x, params, atrous_rates, compute_dtype=jnp.bfloat16))
    assert jnp.allclose(out16, ref, rtol=5e-2, atol=5e-2), \
        float(jnp.max(jnp.abs(out16 - ref)))

    print("KERNEL_OK")
</pallas_src>

<mosaic_0001>
module attributes {stable_mosaic.version = 11 : i64} {
  func.func @_pool_kernel(%arg0: i32, %arg1: i32, %arg2: memref<1x8x16x128xf32, #tpu.memory_space<vmem>>, %arg3: memref<128x256xf32, #tpu.memory_space<vmem>>, %arg4: memref<1x256xf32, #tpu.memory_space<vmem>>, %arg5: memref<256x256xf32, #tpu.memory_space<vmem>>, %arg6: memref<1x1x256xf32, #tpu.memory_space<vmem>>, %arg7: memref<1x128xf32, #tpu.memory_space<vmem>>) attributes {dimension_semantics = [#tpu.dimension_semantics<parallel>, #tpu.dimension_semantics<arbitrary>], iteration_bounds = array<i64: 2, 2>, scalar_prefetch = 0 : i64, scratch_operands = 1 : i64, tpu.core_type = #tpu.core_type<tc>, window_params = [{transform_indices = @transform_0, window_bounds = array<i64: 1, 8, 16, 128>}, {pipeline_mode = #tpu.pipeline_mode<synchronous>, transform_indices = @transform_1, window_bounds = array<i64: 128, 256>}, {pipeline_mode = #tpu.pipeline_mode<synchronous>, transform_indices = @transform_2, window_bounds = array<i64: 1, 256>}, {pipeline_mode = #tpu.pipeline_mode<synchronous>, transform_indices = @transform_3, window_bounds = array<i64: 256, 256>}, {transform_indices = @transform_4, window_bounds = array<i64: 1, 1, 256>}]} {
    %c0_i32 = arith.constant 0 : i32
    %0 = arith.cmpi eq, %arg1, %c0_i32 : i32
    %1 = arith.extui %0 : i1 to i32
    %c0_i32_0 = arith.constant 0 : i32
    %2 = arith.cmpi ne, %1, %c0_i32_0 : i32
    scf.if %2 {
      %cst_9 = arith.constant 0.000000e+00 : f32
      %13 = vector.broadcast %cst_9 : f32 to vector<1x128xf32>
      %c0_10 = arith.constant 0 : index
      %c0_11 = arith.constant 0 : index
      %14 = vector.load %arg7[%c0_10, %c0_11] : memref<1x128xf32, #tpu.memory_space<vmem>>, vector<1x128xf32>
      tpu.vector_store %arg7[%c0_10, %c0_11], %13 {strides = array<i32>} : memref<1x128xf32, #tpu.memory_space<vmem>>, vector<1x128xf32>,
    } else {
    }
    %c0 = arith.constant 0 : index
    %c0_1 = arith.constant 0 : index
    %c0_2 = arith.constant 0 : index
    %c0_3 = arith.constant 0 : index
    %3 = vector.load %arg2[%c0, %c0_1, %c0_2, %c0_3] : memref<1x8x16x128xf32, #tpu.memory_space<vmem>>, vector<1x8x16x128xf32>
    %c0_4 = arith.constant 0 : index
    %c0_5 = arith.constant 0 : index
    %4 = vector.load %arg7[%c0_4, %c0_5] : memref<1x128xf32, #tpu.memory_space<vmem>>, vector<1x128xf32>
    %5 = vector.shape_cast %3 : vector<1x8x16x128xf32> to vector<128x128xf32>
    %cst = arith.constant dense<0.000000e+00> : vector<128xf32>
    %6 = vector.multi_reduction <add>, %5, %cst [0] : vector<128x128xf32> to vector<128xf32>
    %7 = vector.shape_cast %6 : vector<128xf32> to vector<1x128xf32>
    %8 = arith.addf %4, %7 : vector<1x128xf32>
    %c0_6 = arith.constant 0 : index
    %c0_7 = arith.constant 0 : index
    %9 = vector.load %arg7[%c0_6, %c0_7] : memref<1x128xf32, #tpu.memory_space<vmem>>, vector<1x128xf32>
    tpu.vector_store %arg7[%c0_6, %c0_7], %8 {strides = array<i32>} : memref<1x128xf32, #tpu.memory_space<vmem>>, vector<1x128xf32>,
    %c1_i32 = arith.constant 1 : i32
    %10 = arith.cmpi eq, %arg1, %c1_i32 : i32
    %11 = arith.extui %10 : i1 to i32
    %c0_i32_8 = arith.constant 0 : i32
    %12 = arith.cmpi ne, %11, %c0_i32_8 : i32
    scf.if %12 {
      %c0_9 = arith.constant 0 : index
      %c0_10 = arith.constant 0 : index
      %13 = vector.load %arg7[%c0_9, %c0_10] : memref<1x128xf32, #tpu.memory_space<vmem>>, vector<1x128xf32>
      %cst_11 = arith.constant 3.906250e-03 : f32
      %14 = vector.broadcast %cst_11 : f32 to vector<1x128xf32>
      %15 = arith.mulf %13, %14 : vector<1x128xf32>
      %c0_12 = arith.constant 0 : index
      %c0_13 = arith.constant 0 : index
      %16 = vector.load %arg3[%c0_12, %c0_13] : memref<128x256xf32, #tpu.memory_space<vmem>>, vector<128x256xf32>
      %cst_14 = arith.constant dense<0.000000e+00> : vector<1x256xf32>
      %17 = tpu.matmul %15, %16, %cst_14 {dimension_numbers = #tpu.dot_dimension_numbers<[1], [0], [0], [1], [0, 0, 1, 1], [], []>} : vector<1x128xf32>, vector<128x256xf32>, vector<1x256xf32> -> vector<1x256xf32>
      %c0_15 = arith.constant 0 : index
      %c0_16 = arith.constant 0 : index
      %18 = vector.load %arg4[%c0_15, %c0_16] : memref<1x256xf32, #tpu.memory_space<vmem>>, vector<1x256xf32>
      %19 = arith.addf %17, %18 : vector<1x256xf32>
      %cst_17 = arith.constant 0.000000e+00 : f32
      %20 = vector.broadcast %cst_17 : f32 to vector<1x256xf32>
      %21 = arith.maximumf %19, %20 : vector<1x256xf32>
      %c0_18 = arith.constant 0 : index
      %c0_19 = arith.constant 0 : index
      %22 = vector.load %arg5[%c0_18, %c0_19] : memref<256x256xf32, #tpu.memory_space<vmem>>, vector<256x256xf32>
      %cst_20 = arith.constant dense<0.000000e+00> : vector<1x256xf32>
      %23 = tpu.matmul %21, %22, %cst_20 {dimension_numbers = #tpu.dot_dimension_numbers<[1], [0], [0], [1], [0, 0, 1, 1], [], []>} : vector<1x256xf32>, vector<256x256xf32>, vector<1x256xf32> -> vector<1x256xf32>
      %24 = vector.shape_cast %23 : vector<1x256xf32> to vector<1x1x256xf32>
      %c0_21 = arith.constant 0 : index
      %c0_22 = arith.constant 0 : index
      %c0_23 = arith.constant 0 : index
      %25 = vector.load %arg6[%c0_21, %c0_22, %c0_23] : memref<1x1x256xf32, #tpu.memory_space<vmem>>, vector<1x1x256xf32>
      tpu.vector_store %arg6[%c0_21, %c0_22, %c0_23], %24 {strides = array<i32>} : memref<1x1x256xf32, #tpu.memory_space<vmem>>, vector<1x1x256xf32>,
    } else {
    }
    return
  }
  func.func @transform_0(%arg0: i32, %arg1: i32) -> (i32, i32, i32, i32) {
    %c0_i32 = arith.constant 0 : i32
    %c0_i32_0 = arith.constant 0 : i32
    %c0_i32_1 = arith.constant 0 : i32
    return %arg0, %arg1, %c0_i32, %c0_i32_0 : i32, i32, i32, i32
  }
  func.func @transform_1(%arg0: i32, %arg1: i32) -> (i32, i32) {
    %c0_i32 = arith.constant 0 : i32
    %c0_i32_0 = arith.constant 0 : i32
    %c0_i32_1 = arith.constant 0 : i32
    return %c0_i32, %c0_i32_0 : i32, i32
  }
  func.func @transform_2(%arg0: i32, %arg1: i32) -> (i32, i32) {
    %c0_i32 = arith.constant 0 : i32
    %c0_i32_0 = arith.constant 0 : i32
    %c0_i32_1 = arith.constant 0 : i32
    return %c0_i32, %c0_i32_0 : i32, i32
  }
  func.func @transform_3(%arg0: i32, %arg1: i32) -> (i32, i32) {
    %c0_i32 = arith.constant 0 : i32
    %c0_i32_0 = arith.constant 0 : i32
    %c0_i32_1 = arith.constant 0 : i32
    return %c0_i32, %c0_i32_0 : i32, i32
  }
  func.func @transform_4(%arg0: i32, %arg1: i32) -> (i32, i32, i32) {
    %c0_i32 = arith.constant 0 : i32
    %c0_i32_0 = arith.constant 0 : i32
    %c0_i32_1 = arith.constant 0 : i32
    return %arg0, %c0_i32, %c0_i32_0 : i32, i32, i32
  }
}

</mosaic_0001>

<bundles_post_ra>
// kernel: tpu_custom_call.1
= control target key start
LH: loop header
LB: loop body
LE: loop exit
PB: predicated region body
PF: predicated region fallthrough
CT: control target
= control target key end

     0   :  { %s1389_s0 = inlined_call_operand.hbm [shape: f32[2,16,16,128], index: 0, kind: input, shape index: {}]   ;;  %s1390_s1 = inlined_call_operand.hbm [shape: f32[128,256], index: 1, kind: input, shape index: {}]   ;;  %s1391_s2 = inlined_call_operand.hbm [shape: f32[1,256], index: 2, kind: input, shape index: {}]   ;;  %s1392_s3 = inlined_call_operand.hbm [shape: f32[256,256], index: 3, kind: input, shape index: {}]   ;;  %s1393_s4 = inlined_call_operand.hbm [shape: f32[2,1,256], index: 4, kind: output, shape index: {}]  }
   0x1   :  { %1401 = sst [smem:[#allocation22_spill]] %s1390_s1 }
   0x2   :  { %1402 = sst [smem:[#allocation23_spill]] %s1391_s2 }
   0x3   :  { %1403 = sst [smem:[#allocation24_spill]] %s1392_s3 }
   0x4   :  { %1404 = sst [smem:[#allocation25_spill]] %s1393_s4 }
   0x5   :  { %9 = vsyncpa [#allocation4], 0 }
   0x6   :  { %11 = vsyncpa [#allocation4 + $0x1], 0 }
   0x7   :  { %12 = vsyncpa [#allocation7], 0 }
   0x8   :  { %13 = vsyncpa [#allocation10], 0 }
   0x9   :  { %14 = vsyncpa [#allocation5], 0 }
   0xa   :  { %16 = vsyncpa [#allocation5 + $0x1], 0  ;;  %s1147_s15 = smov 0   ;;  %s1149_s16 = smov 0  }
   0xb   :  { %s1151_s17 = smov 0   ;;  %s1153_s18 = smov 0  }
   0xc   :  { %s1155_s19 = smov 0   ;;  %s1157_s20 = smov 0  }
   0xd   :  { %s1159_s21 = smov 0   ;;  %s1161_s22 = smov 0  }
   0xe   :  { %s1163_s23 = smov 0   ;;  %s1165_s24 = smov 0  }
   0xf   :  { %s1167_s25 = smov 0  }
  0x10 LB: > { %1405 = sst [smem:[#allocation16_spill]] %s1072_s15  ;;  %s699_s26 = sadd.s32 4294967295, %s1112_s25   ;;  %s1112_s25 = sphi %s1167_s25, %s22_s25   ;;  %s1108_s24 = sphi %s1165_s24, %s1437_s24   ;;  %s1104_s23 = sphi %s1163_s23, %s1436_s23   ;;  %s1100_s22 = sphi %s1161_s22, %s1435_s22   ;;  %s1096_s21 = sphi %s1159_s21, %s1434_s21   ;;  %s1092_s20 = sphi %s1157_s20, %s1433_s20   ;;  %s1088_s19 = sphi %s1155_s19, %s1432_s19   ;;  %s1084_s18 = sphi %s1153_s18, %s1431_s18   ;;  %s1080_s17 = sphi %s1151_s17, %s1430_s17   ;;  %s1076_s16 = sphi %s1149_s16, %s1429_s16   ;;  %s1072_s15 = sphi %s1147_s15, %s1428_s15  }
  0x11   : > { %1406 = sst [smem:[#allocation17_spill]] %s1100_s22  ;;  %s700_s27 = sadd.s32 4294967294, %s1112_s25  }
  0x12   : > { %p56_p0 = scmp.ne.s32.totalorder %s1088_s19, %s1084_s18  ;;  %p1203_p1 = scmp.eq.s32.totalorder %s699_s26, 0 }
  0x13   : > { %p142_p2 = scmp.ne.s32.totalorder %s1080_s17, %s1076_s16  ;;  %p143_p3 = scmp.eq.s32.totalorder %s699_s26, 3 }
  0x14   : > { %p1211_p4 = por %p1203_p1, %p56_p0  ;;  %p148_p5 = scmp.ne.s32.totalorder %s1076_s16, %s1072_s15 }
  0x15   : > { %p1217_p6 = por %p143_p3, %p142_p2  ;;  %p149_p7 = scmp.eq.s32.totalorder %s700_s27, 3 }
  0x16   : > { %p701_p8 = scmp.ge.s32.totalorder %s1112_s25, 1  ;;  %p156_p9 = scmp.lt.s32.totalorder %s1112_s25, 5 }
  0x17   : > { %s1409_s30 = scalar_select %p1217_p6, 1, 0 }
  0x18   : > { %p1223_p10 = por %p149_p7, %p148_p5  ;;  %p1227_p11 = pnand %p701_p8, %p156_p9 }
  0x19   : > { %1410 = sst [smem:[#allocation18_spill]] %s1409_s30  ;;  %s1114_s10 = smov [#allocation6]  }
  0x1a   : > { %s1411_s5 = scalar_select %p1223_p10, 1, 0 }
  0x1b   : > { %s1414_s1 = sld [smem:[#allocation22_spill]]  ;;  %p740_p12 = pneg %p1227_p11 }
  0x1c   : > { %1412 = sst [smem:[#allocation19_spill]] %s1411_s5  ;;  %s169_s11 = sshll.u32 %s1114_s10, 4  ;;  %s170_s11 = int_to_ptr.vmem [resolvable:$true] %s169_s11 }
  0x1d   : > { %p1238_p13 = pnand %p740_p12, %p1203_p1  ;;  %s1416_s2 = sld [smem:[#allocation23_spill]] }
  0x1e   : > { %s1115_s26 = smov 256   ;;  %s1116_s27 = smov 16  }
  0x1f   : > { %s1417_s3 = sld [smem:[#allocation24_spill]]  ;;  %s1117_s13 = smov [#allocation8]  }
  0x20   : > { %s184_s14 = sshll.u32 %s1117_s13, 4  ;;  %s43_s7 = sadd.s32 1, %s1092_s20  ;;  %s185_s14 = int_to_ptr.vmem [resolvable:$true] %s184_s14 }
  0x21   : > { %s167_s9 = sshll.u32 %s1414_s1, 4  ;;  %s1118_s1 = smov [#allocation9]   ;;  %s168_s9 = int_to_ptr.hbm [resolvable:$true] %s167_s9 }
  0x22   : > { %743 = dma.hbm_to_vmem [thread:$0]  (!%p1238_p13), %s168_s9, 4096, %s170_s11, [#allocation7], %s1115_s26, %s1115_s26, %s1116_s27  }
  0x23   : > { %s182_s18 = sshll.u32 %s1416_s2, 4  ;;  %s195_s2 = sshll.u32 %s1118_s1, 4  ;;  %s183_s18 = int_to_ptr.hbm [resolvable:$true] %s182_s18  ;;  %s196_s2 = int_to_ptr.vmem [resolvable:$true] %s195_s2 }
  0x24   : > { %746 = dma.hbm_to_vmem [thread:$0]  (!%p1238_p13), %s183_s18, 32, %s185_s14, [#allocation7]  }
  0x25   : > { %s193_s10 = sshll.u32 %s1417_s3, 4  ;;  %s31_s9 = sadd.s32 1, %s1104_s23  ;;  %s194_s10 = int_to_ptr.hbm [resolvable:$true] %s193_s10 }
  0x26   : > { %749 = dma.hbm_to_vmem [thread:$0]  (!%p1238_p13), %s194_s10, 8192, %s196_s2, [#allocation10], %s1115_s26, %s1115_s26, %s1116_s27  }
  0x27   : > { %s34_s11 = sadd.s32 1, %s1108_s24  ;;  %p32_p0 = scmp.ge.s32.totalorder %s31_s9, 2 }
  0x28   : > { %p50_p2 = scmp.ne.s32.totalorder %s1092_s20, %s1088_s19  ;;  %p51_p3 = scmp.eq.s32.totalorder %s1112_s25, 0 }
  0x29   : > { %s1439_s9 = smov (%p32_p0, %s31_s9), 0  ;;  %s1441_s11 = smov (!%p32_p0, %s34_s11), %s1108_s24 }
  0x2a   : > { %1418 = sst [smem:[#allocation20_spill]] %s1439_s9  ;;  %s39_s1 = ssub.s32 %s1104_s23, %s1439_s9 }
  0x2b   : > { %p1265_p5 = por %p51_p3, %p50_p2  ;;  %p36_p7 = scmp.ge.s32.totalorder %s1441_s11, 2 }
  0x2c   : > { %s132_s2 = sadd.s32 1, %s1080_s17  ;;  %p761_p8 = scmp.lt.s32.totalorder %s1112_s25, 4 }
  0x2d   : > { %s209_s12 = sand.u32 1, %s1092_s20   ;;  %s1443_s11 = smov (%p36_p7, %s1441_s11), 0 }
  0x2e   : > { %1420 = sst [smem:[#allocation21_spill]] %s1443_s11  ;;  %s706_s26 = sshll.u32 %s209_s12, 7 }
  0x2f   : > { %s38_s27 = ssub.s32 %s1108_s24, %s1443_s11  ;;  %s723_s10 = sshll.u32 %s1104_s23, 4 }
  0x30   : > { %s40_s8 = sor.u32 %s39_s1, %s38_s27  ;;  %p130_p9 = scmp.eq.s32.totalorder %s38_s27, 0 }
  0x31   : > { %p41_p12 = scmp.eq.s32.totalorder %s40_s8, 0  ;;  %s709_s3 = sshll.u32 %s1108_s24, 5 }
  0x32   : > { %s1278_s13 = scalar_select %p130_p9, %s1080_s17, %s132_s2  }
  0x33   : > { %s1281_s14 = scalar_select %p41_p12, %s1092_s20, %s43_s7  }
  0x34   : > { %s213_s9 = scalar_lea.vmem [#allocation3], %s706_s26  ;;  %s219_s15 = sadd.s32 %s723_s10, %s709_s3 }
  0x35   : > { %s224_s5 = sshll.u32 %s213_s9, 4  ;;  %s710_s4 = sshll.u32 %s219_s15, 3  ;;  %s225_s5 = int_to_ptr.vmem [resolvable:$true] %s224_s5 }
  0x36   : > { %p751_p13 = pnand %p761_p8, %p1265_p5  ;;  %s221_s1 = scalar_lea.hbm %s1389_s0, %s710_s4 }
  0x37   : > { %s222_s27 = sshll.u32 %s221_s1, 4  ;;  %s210_s8 = scalar_lea.sflag [#allocation4], %s209_s12  ;;  %s223_s27 = int_to_ptr.hbm [resolvable:$true] %s222_s27 }
  0x38   : > { %s1119_s2 = smov 128   ;;  %s1120_s11 = smov 8  }
  0x39   : > { %753 = dma.hbm_to_vmem [thread:$0]  (!%p751_p13), %s223_s27, 2048, %s225_s5, %s210_s8, %s1119_s2, %s1119_s2, %s1120_s11  }
  0x3a   : > { %236 = sbr.rel (%p1227_p11) target bundleno = 442 (0x1ba), region = 36  ;;  %s238_s3 = sand.u32 (!%p1227_p11), 1, %s1088_s19  }
  0x3b   : > { %s712_s15 = sshll.u32 (!%p1227_p11), %s238_s3, 7  ;;  %s239_s9 = scalar_lea.sflag (!%p1227_p11), [#allocation4], %s238_s3 }
  0x3c   : > { %s1294_s7 = scalar_lea.vmem (!%p1227_p11), [#allocation3], %s712_s15 }
  0x3f   : > { %1055 = dma.done.wait (%p1211_p4), %s239_s9, 2048  }
  0x40   : > { %1057 = vsyncadd (%p1211_p4), %s239_s9, 4294965248 }
  0x41   : > { %1059 = dma.done.wait (%p1203_p1), [#allocation7], 4128  }
  0x42   : > { %1061 = vsyncadd (%p1203_p1), [#allocation7], 4294963168 }
  0x43   : > { %1063 = dma.done.wait (%p1203_p1), [#allocation10], 8192  }
  0x44   : > { %1065 = vsyncadd (%p1203_p1), [#allocation10], 4294959104  ;;  %s280_s4 = sand.u32 1, %s1076_s16   ;;  %p717_p4 = scmp.ne.s32.totalorder %s1096_s21, 0 }
  0x45   : > { %s1311_s22 = sshll.u32 %s280_s4, 1 }
  0x46   : > { %s282_s29 = scalar_lea.vmem [#allocation11], %s1311_s22  ;;  %287 = sbr.rel (%p717_p4) target bundleno = 77 (0x4d), region = 56 }
  0x4b   : > { %v1121_v0 = vmov 0.0  }
  0x4c   : > { %288 = vst [vmem:[#allocation2] sm:$0x1] %v1121_v0 }
  0x4d PF: > { %v289_v1 = vld [vmem:[%s1294_s7] sm:$0xff]  ;;  %v290_v2 = vld [vmem:[%s1294_s7 + $0x8] sm:$0xff]  ;;  %v291_v3 = vld [vmem:[%s1294_s7 + $0x10] sm:$0xff]  ;;  %p718_p1 = scmp.ne.s32.totalorder %s1096_s21, 1 }
  0x4e   : > { %v306_v4 = vadd.f32 %v290_v2, %v289_v1  ;;  %v292_v5 = vld [vmem:[%s1294_s7 + $0x18] sm:$0xff]  ;;  %v293_v7 = vld [vmem:[%s1294_s7 + $0x20] sm:$0xff]  ;;  %v294_v9 = vld [vmem:[%s1294_s7 + $0x28] sm:$0xff] }
  0x4f   : > { %v295_v11 = vld [vmem:[%s1294_s7 + $0x30] sm:$0xff]  ;;  %v296_v13 = vld [vmem:[%s1294_s7 + $0x38] sm:$0xff]  ;;  %v297_v15 = vld [vmem:[%s1294_s7 + $0x40] sm:$0xff] }
  0x50   : > { %v307_v6 = vadd.f32 %v306_v4, %v291_v3  ;;  %v298_v17 = vld [vmem:[%s1294_s7 + $0x48] sm:$0xff]  ;;  %v299_v19 = vld [vmem:[%s1294_s7 + $0x50] sm:$0xff]  ;;  %v300_v21 = vld [vmem:[%s1294_s7 + $0x58] sm:$0xff] }
  0x51   : > { %v301_v23 = vld [vmem:[%s1294_s7 + $0x60] sm:$0xff]  ;;  %v302_v25 = vld [vmem:[%s1294_s7 + $0x68] sm:$0xff]  ;;  %v303_v27 = vld [vmem:[%s1294_s7 + $0x70] sm:$0xff] }
  0x52   : > { %v308_v8 = vadd.f32 %v307_v6, %v292_v5  ;;  %v304_v29 = vld [vmem:[%s1294_s7 + $0x78] sm:$0xff] }
  0x53   : > { %v305_v37 = vld [vmem:[#allocation2] sm:$0x1] }
  0x54   : > { %v309_v10 = vadd.f32 %v308_v8, %v293_v7 }
  0x56   : > { %v310_v12 = vadd.f32 %v309_v10, %v294_v9 }
  0x58   : > { %v311_v14 = vadd.f32 %v310_v12, %v295_v11 }
  0x5a   : > { %v312_v16 = vadd.f32 %v311_v14, %v296_v13 }
  0x5c   : > { %v313_v18 = vadd.f32 %v312_v16, %v297_v15 }
  0x5e   : > { %v314_v20 = vadd.f32 %v313_v18, %v298_v17 }
  0x60   : > { %v315_v22 = vadd.f32 %v314_v20, %v299_v19 }
  0x62   : > { %v316_v24 = vadd.f32 %v315_v22, %v300_v21 }
  0x64   : > { %v317_v26 = vadd.f32 %v316_v24, %v301_v23 }
  0x66   : > { %v318_v28 = vadd.f32 %v317_v26, %v302_v25 }
  0x68   : > { %v319_v30 = vadd.f32 %v318_v28, %v303_v27 }
  0x6a   : > { %v320_v31 = vadd.f32 %v319_v30, %v304_v29 }
  0x6c   : > { %v321_v32 = vrot.slane %v320_v31, 4 }
  0x6e   : > { %v322_v33 = vadd.f32 %v321_v32, %v320_v31 }
  0x70   : > { %v323_v34 = vrot.slane %v322_v33, 2 }
  0x72   : > { %v324_v35 = vadd.f32 %v323_v34, %v322_v33 }
  0x74   : > { %v325_v36 = vrot.slane %v324_v35, 1 }
  0x76   : > { %v326_v38 = vadd.f32 %v325_v36, %v324_v35  ;;  %332 = sbr.rel (%p718_p1) target bundleno = 421 (0x1a5), region = 60 }
  0x78   : > { %v327_v39 = vadd.f32 %v326_v38, %v305_v37 }
  0x7a   : > { %328 = vst [vmem:[#allocation2] sm:$0x1] %v327_v39 }
  0x7b   : > { %v365_v40 = vld [vmem:[#allocation6 + $0xf0] sm:$0xff]  ;;  %v366_v41 = vld [vmem:[#allocation6 + $0xf8] sm:$0xff]  ;;  %v363_v42 = vld [vmem:[#allocation6 + $0xe0] sm:$0xff]  ;;  %vm562_vm0 = vcmask 1040384  }
  0x7c   : > { %373 = vmatpush.msra.mxu0 %v365_v40  ;;  %393 = vmatpush.msra.mxu1 %v366_v41  ;;  %v364_v43 = vld [vmem:[#allocation6 + $0xe8] sm:$0xff]  ;;  %v361_v44 = vld [vmem:[#allocation6 + $0xd0] sm:$0xff]  ;;  %v362_v45 = vld [vmem:[#allocation6 + $0xd8] sm:$0xff] }
  0x7d   : > { %v359_v46 = vld [vmem:[#allocation6 + $0xc0] sm:$0xff]  ;;  %v360_v47 = vld [vmem:[#allocation6 + $0xc8] sm:$0xff]  ;;  %v357_v48 = vld [vmem:[#allocation6 + $0xb0] sm:$0xff] }
  0x7e   : > { %374 = vmatpush.msra.mxu0 %v363_v42  ;;  %394 = vmatpush.msra.mxu1 %v364_v43  ;;  %v358_v49 = vld [vmem:[#allocation6 + $0xb8] sm:$0xff]  ;;  %v355_v50 = vld [vmem:[#allocation6 + $0xa0] sm:$0xff]  ;;  %v356_v51 = vld [vmem:[#allocation6 + $0xa8] sm:$0xff] }
  0x7f   : > { %v353_v52 = vld [vmem:[#allocation6 + $0x90] sm:$0xff]  ;;  %v354_v53 = vld [vmem:[#allocation6 + $0x98] sm:$0xff]  ;;  %v351_v54 = vld [vmem:[#allocation6 + $0x80] sm:$0xff] }
  0x80   : > { %375 = vmatpush.msra.mxu0 %v361_v44  ;;  %395 = vmatpush.msra.mxu1 %v362_v45  ;;  %v445_v55 = vld [vmem:[#allocation9 + $0xf0] sm:$0xff]  ;;  %v352_v57 = vld [vmem:[#allocation6 + $0x88] sm:$0xff]  ;;  %v347_v2 = vld [vmem:[#allocation6 + $0x60] sm:$0xff] }
  0x81   : > { %v477_v56 = vld [vmem:[#allocation9 + $0x1f0] sm:$0xff]  ;;  %479 = vmatpush.msra.mxu2 %v445_v55  ;;  %v443_v58 = vld [vmem:[#allocation9 + $0xe0] sm:$0xff]  ;;  %v333_v20 = vld [vmem:[#allocation2] sm:$0x1] }
  0x82   : > { %376 = vmatpush.msra.mxu0 %v359_v46  ;;  %396 = vmatpush.msra.mxu1 %v360_v47  ;;  %v475_v59 = vld [vmem:[#allocation9 + $0x1e0] sm:$0xff]  ;;  %v441_v60 = vld [vmem:[#allocation9 + $0xd0] sm:$0xff]  ;;  %v334_v29 = vmul.f32 0.00390625, %v333_v20  ;;  %v446_v30 = vld [vmem:[#allocation9 + $0xf8] sm:$0xff] }
  0x83   : > { %499 = vmatpush.msra.mxu3 %v477_v56  ;;  %v349_v61 = vld [vmem:[#allocation6 + $0x70] sm:$0xff]  ;;  %v350_v62 = vld [vmem:[#allocation6 + $0x78] sm:$0xff]  ;;  %480 = vmatpush.msra.mxu2 %v443_v58  ;;  %v439_v0 = vld [vmem:[#allocation9 + $0xc0] sm:$0xff] }
  0x84   : > { %377 = vmatpush.msra.mxu0 %v357_v48  ;;  %397 = vmatpush.msra.mxu1 %v358_v49  ;;  %v473_v63 = vld [vmem:[#allocation9 + $0x1d0] sm:$0xff]  ;;  %v471_v1 = vld [vmem:[#allocation9 + $0x1c0] sm:$0xff]  ;;  %v478_v31 = vld [vmem:[#allocation9 + $0x1f8] sm:$0xff] }
  0x85   : > { %500 = vmatpush.msra.mxu3 %v475_v59  ;;  %v348_v3 = vld [vmem:[#allocation6 + $0x68] sm:$0xff]  ;;  %481 = vmatpush.msra.mxu2 %v441_v60  ;;  %v437_v4 = vld [vmem:[#allocation9 + $0xb0] sm:$0xff]  ;;  %v343_v10 = vld [vmem:[#allocation6 + $0x40] sm:$0xff] }
  0x86   : > { %378 = vmatpush.msra.mxu0 %v355_v50  ;;  %398 = vmatpush.msra.mxu1 %v356_v51  ;;  %v469_v5 = vld [vmem:[#allocation9 + $0x1b0] sm:$0xff]  ;;  %v435_v8 = vld [vmem:[#allocation9 + $0xa0] sm:$0xff]  ;;  %v444_v34 = vld [vmem:[#allocation9 + $0xe8] sm:$0xff] }
  0x87   : > { %501 = vmatpush.msra.mxu3 %v473_v63  ;;  %v345_v6 = vld [vmem:[#allocation6 + $0x50] sm:$0xff]  ;;  %v346_v7 = vld [vmem:[#allocation6 + $0x58] sm:$0xff]  ;;  %482 = vmatpush.msra.mxu2 %v439_v0  ;;  %v467_v9 = vld [vmem:[#allocation9 + $0x1a0] sm:$0xff] }
  0x88   : > { %379 = vmatpush.msra.mxu0 %v353_v52  ;;  %399 = vmatpush.msra.mxu1 %v354_v53  ;;  %v344_v11 = vld [vmem:[#allocation6 + $0x48] sm:$0xff]  ;;  %v433_v12 = vld [vmem:[#allocation9 + $0x90] sm:$0xff]  ;;  %v339_v18 = vld [vmem:[#allocation6 + $0x20] sm:$0xff] }
  0x89   : > { %502 = vmatpush.msra.mxu3 %v471_v1  ;;  %483 = vmatpush.msra.mxu2 %v437_v4  ;;  %v465_v13 = vld [vmem:[#allocation9 + $0x190] sm:$0xff]  ;;  %v431_v16 = vld [vmem:[#allocation9 + $0x80] sm:$0xff]  ;;  %v476_v35 = vld [vmem:[#allocation9 + $0x1e8] sm:$0xff] }
  0x8a   : > { %380 = vmatpush.msra.mxu0 %v351_v54  ;;  %400 = vmatpush.msra.mxu1 %v352_v57  ;;  %v341_v14 = vld [vmem:[#allocation6 + $0x30] sm:$0xff]  ;;  %v342_v15 = vld [vmem:[#allocation6 + $0x38] sm:$0xff]  ;;  %v463_v17 = vld [vmem:[#allocation9 + $0x180] sm:$0xff] }
  0x8b   : > { %503 = vmatpush.msra.mxu3 %v469_v5  ;;  %484 = vmatpush.msra.mxu2 %v435_v8  ;;  %v340_v19 = vld [vmem:[#allocation6 + $0x28] sm:$0xff]  ;;  %v429_v21 = vld [vmem:[#allocation9 + $0x70] sm:$0xff]  ;;  %v335_v27 = vld [vmem:[#allocation6] sm:$0xff] }
  0x8c   : > { %381 = vmatpush.msra.mxu0 %v349_v61  ;;  %401 = vmatpush.msra.mxu1 %v350_v62  ;;  %v461_v22 = vld [vmem:[#allocation9 + $0x170] sm:$0xff]  ;;  %v427_v25 = vld [vmem:[#allocation9 + $0x60] sm:$0xff]  ;;  %v442_v38 = vld [vmem:[#allocation9 + $0xd8] sm:$0xff] }
  0x8d   : > { %504 = vmatpush.msra.mxu3 %v467_v9  ;;  %485 = vmatpush.msra.mxu2 %v433_v12  ;;  %v337_v23 = vld [vmem:[#allocation6 + $0x10] sm:$0xff]  ;;  %v338_v24 = vld [vmem:[#allocation6 + $0x18] sm:$0xff]  ;;  %v459_v26 = vld [vmem:[#allocation9 + $0x160] sm:$0xff] }
  0x8e   : > { %382 = vmatpush.msra.mxu0 %v347_v2  ;;  %402 = vmatpush.msra.mxu1 %v348_v3  ;;  %v336_v28 = vld [vmem:[#allocation6 + $0x8] sm:$0xff]  ;;  %v425_v32 = vld [vmem:[#allocation9 + $0x50] sm:$0xff]  ;;  %v474_v39 = vld [vmem:[#allocation9 + $0x1d8] sm:$0xff] }
  0x8f   : > { %505 = vmatpush.msra.mxu3 %v465_v13  ;;  %486 = vmatpush.msra.mxu2 %v431_v16  ;;  %v457_v33 = vld [vmem:[#allocation9 + $0x150] sm:$0xff]  ;;  %v423_v36 = vld [vmem:[#allocation9 + $0x40] sm:$0xff]  ;;  %v440_v42 = vld [vmem:[#allocation9 + $0xc8] sm:$0xff] }
  0x90   : > { %383 = vmatpush.msra.mxu0 %v345_v6  ;;  %403 = vmatpush.msra.mxu1 %v346_v7  ;;  %v455_v37 = vld [vmem:[#allocation9 + $0x140] sm:$0xff]  ;;  %v421_v40 = vld [vmem:[#allocation9 + $0x30] sm:$0xff]  ;;  %v472_v43 = vld [vmem:[#allocation9 + $0x1c8] sm:$0xff] }
  0x91   : > { %506 = vmatpush.msra.mxu3 %v463_v17  ;;  %487 = vmatpush.msra.mxu2 %v429_v21  ;;  %v453_v41 = vld [vmem:[#allocation9 + $0x130] sm:$0xff]  ;;  %v438_v44 = vld [vmem:[#allocation9 + $0xb8] sm:$0xff]  ;;  %v436_v46 = vld [vmem:[#allocation9 + $0xa8] sm:$0xff] }
  0x92   : > { %384 = vmatpush.msra.mxu0 %v343_v10  ;;  %404 = vmatpush.msra.mxu1 %v344_v11  ;;  %v470_v45 = vld [vmem:[#allocation9 + $0x1b8] sm:$0xff]  ;;  %v468_v47 = vld [vmem:[#allocation9 + $0x1a8] sm:$0xff]  ;;  %v419_v62 = vld [vmem:[#allocation9 + $0x20] sm:$0xff] }
  0x93   : > { %507 = vmatpush.msra.mxu3 %v461_v22  ;;  %488 = vmatpush.msra.mxu2 %v427_v25  ;;  %v434_v48 = vld [vmem:[#allocation9 + $0x98] sm:$0xff]  ;;  %v432_v50 = vld [vmem:[#allocation9 + $0x88] sm:$0xff]  ;;  %v451_v63 = vld [vmem:[#allocation9 + $0x120] sm:$0xff]  ;;  %v565_v22 = vlaneseq }
  0x94   : > { %385 = vmatpush.msra.mxu0 %v341_v14  ;;  %405 = vmatpush.msra.mxu1 %v342_v15  ;;  %v466_v49 = vld [vmem:[#allocation9 + $0x198] sm:$0xff]  ;;  %v464_v51 = vld [vmem:[#allocation9 + $0x188] sm:$0xff]  ;;  %v417_v2 = vld [vmem:[#allocation9 + $0x10] sm:$0xff] }
  0x95   : > { %508 = vmatpush.msra.mxu3 %v459_v26  ;;  %489 = vmatpush.msra.mxu2 %v425_v32  ;;  %v430_v52 = vld [vmem:[#allocation9 + $0x78] sm:$0xff]  ;;  %v428_v54 = vld [vmem:[#allocation9 + $0x68] sm:$0xff]  ;;  %v449_v3 = vld [vmem:[#allocation9 + $0x110] sm:$0xff]  ;;  %vm567_vm1 = vcmp.lt.s32.totalorder %v565_v22, 256 }
  0x96   : > { %386 = vmatpush.msra.mxu0 %v339_v18  ;;  %406 = vmatpush.msra.mxu1 %v340_v19  ;;  %v462_v53 = vld [vmem:[#allocation9 + $0x178] sm:$0xff]  ;;  %v460_v55 = vld [vmem:[#allocation9 + $0x168] sm:$0xff]  ;;  %v415_v6 = vld [vmem:[#allocation9] sm:$0xff] }
  0x97   : > { %509 = vmatpush.msra.mxu3 %v457_v33  ;;  %490 = vmatpush.msra.mxu2 %v423_v36  ;;  %v426_v56 = vld [vmem:[#allocation9 + $0x58] sm:$0xff]  ;;  %v424_v58 = vld [vmem:[#allocation9 + $0x48] sm:$0xff]  ;;  %v447_v7 = vld [vmem:[#allocation9 + $0x100] sm:$0xff] }
  0x98   : > { %387 = vmatpush.msra.mxu0 %v337_v23  ;;  %407 = vmatpush.msra.mxu1 %v338_v24  ;;  %v458_v57 = vld [vmem:[#allocation9 + $0x158] sm:$0xff]  ;;  %v456_v59 = vld [vmem:[#allocation9 + $0x148] sm:$0xff] }
  0x99   : > { %510 = vmatpush.msra.mxu3 %v455_v37  ;;  %491 = vmatpush.msra.mxu2 %v421_v40  ;;  %v422_v60 = vld [vmem:[#allocation9 + $0x38] sm:$0xff]  ;;  %v420_v0 = vld [vmem:[#allocation9 + $0x28] sm:$0xff] }
  0x9a   : > { %388 = vmatpush.msra.mxu0 %v335_v27  ;;  %408 = vmatpush.msra.mxu1 %v336_v28  ;;  %v454_v61 = vld [vmem:[#allocation9 + $0x138] sm:$0xff]  ;;  %v452_v1 = vld [vmem:[#allocation9 + $0x128] sm:$0xff] }
  0x9b   : > { %389 = vmatmul.f32.vlgmr.msra.gmra.mxu0 %v334_v29  ;;  %409 = vmatmul.f32.vlgmr.msra.gmra.mxu1 %v334_v29  ;;  %v418_v4 = vld [vmem:[#allocation9 + $0x18] sm:$0xff]  ;;  %v416_v8 = vld [vmem:[#allocation9 + $0x8] sm:$0xff] }
  0x9c   : > { %519 = vmatpush.msrb.mxu0 %v446_v30  ;;  %539 = vmatpush.msrb.mxu1 %v478_v31  ;;  %v450_v5 = vld [vmem:[#allocation9 + $0x118] sm:$0xff]  ;;  %v448_v9 = vld [vmem:[#allocation9 + $0x108] sm:$0xff] }
  0x9d   : > { %511 = vmatpush.msra.mxu3 %v453_v41  ;;  %492 = vmatpush.msra.mxu2 %v419_v62  ;;  %v367_v10 = vld [vmem:[#allocation8] sm:$0x3] }
  0x9e   : > { %520 = vmatpush.msrb.mxu0 %v444_v34  ;;  %540 = vmatpush.msrb.mxu1 %v476_v35  ;;  %v369_v11 = vperm.slane %v367_v10, 0  ;;  %v370_v12 = vperm.slane %v367_v10, 1 }
  0x9f   : > { %512 = vmatpush.msra.mxu3 %v451_v63  ;;  %493 = vmatpush.msra.mxu2 %v417_v2 }
  0xa0   : > { %521 = vmatpush.msrb.mxu0 %v442_v38  ;;  %541 = vmatpush.msrb.mxu1 %v474_v39 }
  0xa1   : > { %513 = vmatpush.msra.mxu3 %v449_v3  ;;  %494 = vmatpush.msra.mxu2 %v415_v6 }
  0xa2   : > { %522 = vmatpush.msrb.mxu0 %v440_v42  ;;  %542 = vmatpush.msrb.mxu1 %v472_v43 }
  0xa3   : > { %514 = vmatpush.msra.mxu3 %v447_v7 }
  0xa4   : > { %523 = vmatpush.msrb.mxu0 %v438_v44  ;;  %543 = vmatpush.msrb.mxu1 %v470_v45 }
  0xa6   : > { %524 = vmatpush.msrb.mxu0 %v436_v46  ;;  %544 = vmatpush.msrb.mxu1 %v468_v47 }
  0xa8   : > { %525 = vmatpush.msrb.mxu0 %v434_v48  ;;  %545 = vmatpush.msrb.mxu1 %v466_v49 }
  0xaa   : > { %526 = vmatpush.msrb.mxu0 %v432_v50  ;;  %546 = vmatpush.msrb.mxu1 %v464_v51 }
  0xac   : > { %527 = vmatpush.msrb.mxu0 %v430_v52  ;;  %547 = vmatpush.msrb.mxu1 %v462_v53 }
  0xae   : > { %528 = vmatpush.msrb.mxu0 %v428_v54  ;;  %548 = vmatpush.msrb.mxu1 %v460_v55 }
  0xb0   : > { %529 = vmatpush.msrb.mxu0 %v426_v56  ;;  %549 = vmatpush.msrb.mxu1 %v458_v57 }
  0xb2   : > { %530 = vmatpush.msrb.mxu0 %v424_v58  ;;  %550 = vmatpush.msrb.mxu1 %v456_v59 }
  0xb4   : > { %531 = vmatpush.msrb.mxu0 %v422_v60  ;;  %551 = vmatpush.msrb.mxu1 %v454_v61 }
  0xb6   : > { %532 = vmatpush.msrb.mxu0 %v420_v0  ;;  %552 = vmatpush.msrb.mxu1 %v452_v1 }
  0xb8   : > { %533 = vmatpush.msrb.mxu0 %v418_v4  ;;  %553 = vmatpush.msrb.mxu1 %v450_v5 }
  0xba   : > { %534 = vmatpush.msrb.mxu0 %v416_v8  ;;  %554 = vmatpush.msrb.mxu1 %v448_v9 }
 0x118   : > { %v390_v13 = vpop.f32.mrf.mxu0  ;;  %v410_v14 = vpop.f32.mrf.mxu1 }
 0x119   : > { %v391_v15 = vadd.f32 %v390_v13, %v369_v11  ;;  %v411_v16 = vadd.f32 %v410_v14, %v370_v12 }
 0x11b   : > { %v413_v17 = vmax.f32 %v391_v15, 0.0  ;;  %v414_v18 = vmax.f32 %v411_v16, 0.0 }
 0x11d   : > { %495 = vmatmul.f32.vlgmr.msra.gmra.mxu2 %v413_v17  ;;  %515 = vmatmul.f32.vlgmr.msra.gmra.mxu3 %v414_v18 }
 0x11e   : > { %535 = vmatmul.f32.vlgmr.msrb.gmra.mxu0 %v413_v17  ;;  %555 = vmatmul.f32.vlgmr.msrb.gmra.mxu1 %v414_v18 }
 0x19b   : > { %v536_v19 = vpop.f32.mrf.mxu0  ;;  %v556_v20 = vpop.f32.mrf.mxu1 }
 0x19c   : > { %v557_v21 = vadd.f32 %v556_v20, %v536_v19 }
 0x19e   : > { %v561_v25 = vrot.slane %v557_v21, 7 }
 0x1a0   : > { %v496_v23 = vpop.f32.mrf.mxu2  ;;  %v516_v24 = vpop.f32.mrf.mxu3 }
 0x1a1   : > { %v517_v26 = vadd.f32 %v516_v24, %v496_v23 }
 0x1a3   : > { %v563_v27 = vsel %vm562_vm0, %v517_v26, %v561_v25 }
 0x1a4   : > { %569 = vst.msk [vmem:[%s282_s29] sm:$0x3] %vm567_vm1, %v563_v27 }
 0x1a5 PF: > { %s1421_s21 = sld [smem:[#allocation17_spill]]  ;;  %s583_s12 = sshll.u32 %s282_s29, 4  ;;  %s584_s12 = int_to_ptr.vmem [resolvable:$true] %s583_s12 }
 0x1a6   : > { %s1423_s11 = sld [smem:[#allocation25_spill]]  ;;  %s571_s10 = scalar_lea.sflag [#allocation5], %s280_s4 }
 0x1ab   : > { %s720_s30 = sshll.u32 %s1421_s21, 1 }
 0x1ac   : > { %s581_s18 = scalar_lea.hbm %s1423_s11, %s720_s30  ;;  %s1002_s3 = scalar_lea.hbm %s1423_s11, 4 }
 0x1ad   : > { %s585_s26 = sshll.u32 %s581_s18, 4  ;;  %s586_s26 = int_to_ptr.hbm [resolvable:$true] %s585_s26 }
 0x1ae   : > { %s996_s1 = sshra.s32 %s586_s26, 4  ;;  %s997_s1 = int_to_ptr.hbm [resolvable:$true] %s996_s1 }
 0x1af   : > { %s998_s27 = scalar_lea.hbm %s997_s1, 2  ;;  %p1003_p3 = scmp.lt.s32.totalorder %s997_s1, %s1423_s11 }
 0x1b0   : > { %p999_p11 = scmp.ne.s32.totalorder %s997_s1, %s998_s27  ;;  %p1004_p5 = scmp.lt.s32.totalorder %s1002_s3, %s998_s27 }
 0x1b2   : > { %p1000_p0 = pnand %p999_p11, %p1217_p6  ;;  %p1005_p7 = por %p1004_p5, %p1003_p3 }
 0x1b4   : > { %p1001_p2 = pneg %p1000_p0 }
 0x1b6   : > { %p1006_p8 = pnand %p1005_p7, %p1001_p2 }
 0x1b8   : > { %1009 = shalt.err (!%p1006_p8)
}
 0x1b9   : > { %738 = dma.vmem_to_hbm [thread:$0]  (%p1217_p6), %s584_s12, 32, %s586_s26, %s571_s10  }
 0x1ba PF: > { %s1424_s7 = sld [smem:[#allocation16_spill]]  ;;  %p765_p9 = scmp.ge.s32.totalorder %s1112_s25, 2 }
 0x1bc   : > { %p755_p12 = pnand %p765_p9, %p1223_p10 }
 0x1be   : > { %p756_p13 = pneg %p755_p12 }
 0x1c0   : > { %s597_s22 = sand.u32 1, %s1424_s7  }
 0x1c1   : > { %s598_s29 = scalar_lea.sflag [#allocation5], %s597_s22 }
 0x1c2   : > { %1067 = dma.done.wait (%p756_p13), %s598_s29, 32  }
 0x1c3   : > { %1069 = vsyncadd (%p756_p13), %s598_s29, 4294967264  ;;  %s22_s25 = sadd.s32 1, %s1112_s25   ;;  %s1426_s28 = sld [smem:[#allocation20_spill]] }
 0x1c4   : > { %p19_p4 = scmp.ge.s32.totalorder %s22_s25, 6   ;;  %s1427_s30 = sld [smem:[#allocation21_spill]] }
 0x1c5   : > { %s1428_s15 = smov %s1076_s16  ;;  %s1429_s16 = smov %s1080_s17 }
 0x1c6   : > { %s1430_s17 = smov %s1278_s13  ;;  %s1431_s18 = smov %s1088_s19 }
 0x1c7   : > { %s1432_s19 = smov %s1092_s20  ;;  %s1433_s20 = smov %s1281_s14 }
 0x1c8   : > { %s1434_s21 = smov %s1104_s23  ;;  %s1435_s22 = smov %s1108_s24 }
 0x1c9   : > { %s1436_s23 = smov %s1426_s28  ;;  %21 = sbr.rel (!%p19_p4) target bundleno = 16 (0x10), region = 101 }
 0x1ca   : > { %s1437_s24 = smov %s1427_s30 }
 0x1ce   :  { %604 = vsyncpa [#allocation4], 1 }
 0x1cf   :  { %606 = vsyncpa [#allocation4 + $0x1], 1 }
 0x1d0   :  { %607 = vsyncpa [#allocation7], 1 }
 0x1d1   :  { %608 = vsyncpa [#allocation10], 1 }
 0x1d2   :  { %609 = vsyncpa [#allocation5], 1 }
 0x1d3   :  { %611 = vsyncpa [#allocation5 + $0x1], 1 }

</bundles_post_ra>
